<compile_context>
chip_gen: v6e
topology: v6e:2x2x1
jax: 0.10.0
libtpu: 0.0.40
codegen_flags: <defaults>
</compile_context>

<pallas_src>
import jax
import jax.numpy as jnp
from jax.experimental import pallas as pl
from jax.experimental.pallas import tpu as pltpu


# ---------------------------------------------------------------------------
# Kernels
# ---------------------------------------------------------------------------
def _linear_kernel(x_ref, w_ref, b_ref, o_ref):
    """Single-pass tile: o = x @ w + b (full K, no reduction axis).

    x_ref: (Mp, K)  f32 activations (cast to bf16 in-register, no HBM round trip)
    w_ref: (K, tn)  bf16 weight slab (stored [in, out])
    b_ref: (1, tn)  f32 bias slab
    o_ref: (Mp, tn) output tile
    """
    x = x_ref[...].astype(jnp.bfloat16)
    acc = jnp.dot(x, w_ref[...], preferred_element_type=jnp.float32)
    o_ref[...] = (acc + b_ref[...]).astype(o_ref.dtype)


def _linear_kernel_ktiled(x_ref, w_ref, b_ref, o_ref, acc_ref):
    """K-tiled fallback used only when a full-K weight slab would not fit VMEM."""
    k = pl.program_id(1)

    @pl.when(k == 0)
    def _():
        acc_ref[...] = jnp.zeros_like(acc_ref)

    x = x_ref[...].astype(jnp.bfloat16)
    acc_ref[...] += jnp.dot(x, w_ref[...], preferred_element_type=jnp.float32)

    @pl.when(k == pl.num_programs(1) - 1)
    def _():
        o_ref[...] = (acc_ref[...] + b_ref[...]).astype(o_ref.dtype)


# ---------------------------------------------------------------------------
# Tile planning (conservative VMEM budget; safe on v5e/v6e/v7x)
# ---------------------------------------------------------------------------
_VMEM_PLAN_BUDGET = 24 << 20   # fits comfortably inside v7x's 64 MiB physical VMEM
_VMEM_LIMIT_CAP = 32 << 20     # never request more than the v7x scoped default


def _fullk_vmem_bytes(mp, k, tn, out_bytes):
    # double-buffered x (f32), w (bf16), bias (f32, padded to 8 rows), output
    return 2 * (mp * k * 4 + k * tn * 2 + 8 * tn * 4 + mp * tn * out_bytes)


def _ktiled_vmem_bytes(mp, tk, tn, out_bytes):
    return (2 * (mp * tk * 4 + tk * tn * 2 + 8 * tn * 4 + mp * tn * out_bytes)
            + mp * tn * 4)  # + f32 accumulator scratch (single-buffered)


def _plan_tiles(mp, k, n, out_bytes):
    """Return (tn, tk); tk is None for the single-pass full-K path."""
    tn_cands = [n] + [t for t in (4096, 2048, 1024, 512, 256, 128)
                      if t < n and n % t == 0]
    # Prefer the largest N slab with full K: fewest grid steps (~0.35 us each).
    for tn in tn_cands:
        if _fullk_vmem_bytes(mp, k, tn, out_bytes) <= _VMEM_PLAN_BUDGET:
            return tn, None
    # Fallback: tile K as well so the weight slab is bounded regardless of K.
    for tn in tn_cands:
        for tk in (2048, 1024, 512, 256):
            if k % tk == 0 and _ktiled_vmem_bytes(mp, tk, tn, out_bytes) <= _VMEM_PLAN_BUDGET:
                return tn, tk
    # Last resort: smallest N slab, full K (128 MiB chips will still hold it).
    return tn_cands[-1], None


# ---------------------------------------------------------------------------
# Forward pass (y = x @ W_T + b)
# ---------------------------------------------------------------------------
@jax.jit
def estimator_forward(lr_features, w_t, b):
    """Equivalent to torch nn.Linear forward.

    lr_features: (..., K) f32 activations.
    w_t:         (K, N)   weight, transposed to [input_dim, output_dim],
                          stored persistently in bf16 (cast once at init).
    b:           (N,)     f32 bias.
    """
    orig_shape = lr_features.shape
    K = orig_shape[-1]
    Kw, N = w_t.shape
    assert K == Kw, "weight/input dim mismatch"
    out_dtype = lr_features.dtype

    x = lr_features.reshape(-1, K)
    M = x.shape[0]

    # Weight should already be bf16 (cast once at init). Only fall back to an
    # in-graph cast if a caller hands us f32.
    if w_t.dtype != jnp.bfloat16:
        w_t = w_t.astype(jnp.bfloat16)
    b2 = b.astype(jnp.float32).reshape(1, N)

    # Pad batch to a multiple of 16: bf16 packs 16 rows per vreg sublane group,
    # so a 16-row tile avoids half-empty packed vregs in the MXU feed.
    m_pad = (-M) % 16
    if m_pad:
        x = jnp.pad(x, ((0, m_pad), (0, 0)))
    Mp = M + m_pad

    out_bytes = jnp.dtype(out_dtype).itemsize
    tn, tk = _plan_tiles(Mp, K, N, out_bytes)

    cost = pl.CostEstimate(
        flops=2 * Mp * K * N,
        bytes_accessed=Mp * K * 4 + K * N * 2 + N * 4 + Mp * N * out_bytes,
        transcendentals=0,
    )

    if tk is None:
        # Single-pass full-K path (default shapes land here with grid=(1,)).
        vmem_bytes = _fullk_vmem_bytes(Mp, K, tn, out_bytes)
        y = pl.pallas_call(
            _linear_kernel,
            out_shape=jax.ShapeDtypeStruct((Mp, N), out_dtype),
            grid=(N // tn,),
            in_specs=[
                pl.BlockSpec((Mp, K), lambda j: (0, 0)),   # activations (grid-resident)
                pl.BlockSpec((K, tn), lambda j: (0, j)),   # weight column slab
                pl.BlockSpec((1, tn), lambda j: (0, j)),   # bias slab
            ],
            out_specs=pl.BlockSpec((Mp, tn), lambda j: (0, j)),
            compiler_params=pltpu.CompilerParams(
                dimension_semantics=("parallel",),
                vmem_limit_bytes=min(_VMEM_LIMIT_CAP,
                                     max(vmem_bytes + (2 << 20), 8 << 20)),
            ),
            cost_estimate=cost,
        )(x, w_t, b2)
    else:
        # K-tiled fallback: reduction axis last, f32 accumulator scratch.
        vmem_bytes = _ktiled_vmem_bytes(Mp, tk, tn, out_bytes)
        y = pl.pallas_call(
            _linear_kernel_ktiled,
            out_shape=jax.ShapeDtypeStruct((Mp, N), out_dtype),
            grid=(N // tn, K // tk),
            in_specs=[
                pl.BlockSpec((Mp, tk), lambda j, kk: (0, kk)),
                pl.BlockSpec((tk, tn), lambda j, kk: (kk, j)),
                pl.BlockSpec((1, tn), lambda j, kk: (0, j)),
            ],
            out_specs=pl.BlockSpec((Mp, tn), lambda j, kk: (0, j)),
            scratch_shapes=[pltpu.VMEM((Mp, tn), jnp.float32)],
            compiler_params=pltpu.CompilerParams(
                dimension_semantics=("parallel", "arbitrary"),
                vmem_limit_bytes=min(_VMEM_LIMIT_CAP,
                                     max(vmem_bytes + (2 << 20), 8 << 20)),
            ),
            cost_estimate=cost,
        )(x, w_t, b2)

    if m_pad:
        y = y[:M]
    return y.reshape(orig_shape[:-1] + (N,))


# ---------------------------------------------------------------------------
# Parameter init (nn.Linear default: U(-1/sqrt(in), 1/sqrt(in)))
# ---------------------------------------------------------------------------
def init_estimator_params(key, input_dim=1024, output_dim=512):
    """Weight returned transposed (K, N) and cast to bf16 ONCE here so the hot
    path never re-casts / re-materializes the dominant HBM stream per call."""
    kw, kb = jax.random.split(key)
    bound = 1.0 / float(input_dim) ** 0.5
    w_t = jax.random.uniform(
        kw, (input_dim, output_dim), jnp.float32, minval=-bound, maxval=bound
    ).astype(jnp.bfloat16)
    b = jax.random.uniform(
        kb, (output_dim,), jnp.float32, minval=-bound, maxval=bound
    )
    return w_t, b


if __name__ == "__main__":
    key = jax.random.PRNGKey(0)
    k_x, k_p = jax.random.split(key)

    batch, input_dim, output_dim = 8, 1024, 512

    lr_features = jax.random.normal(k_x, (batch, input_dim), dtype=jnp.float32)
    w_t, b = init_estimator_params(k_p, input_dim, output_dim)

    out = jax.block_until_ready(estimator_forward(lr_features, w_t, b))

    # Reference: f32 activations against the stored (bf16) weight; the kernel
    # additionally rounds activations to bf16 for the MXU, hence the tolerance.
    ref = lr_features @ w_t.astype(jnp.float32) + b

    assert out.shape == (batch, output_dim)
    assert bool(jnp.allclose(out, ref, atol=2e-2, rtol=2e-2)), (
        float(jnp.max(jnp.abs(out - ref)))
    )

    print("KERNEL_OK")
</pallas_src>

<mosaic_0001>
module attributes {stable_mosaic.version = 11 : i64} {
  func.func @_linear_kernel(%arg0: i32, %arg1: memref<16x1024xf32, #tpu.memory_space<vmem>>, %arg2: memref<1024x512xbf16, #tpu.memory_space<vmem>>, %arg3: memref<1x512xf32, #tpu.memory_space<vmem>>, %arg4: memref<16x512xf32, #tpu.memory_space<vmem>>) attributes {dimension_semantics = [#tpu.dimension_semantics<parallel>], iteration_bounds = array<i64: 1>, scalar_prefetch = 0 : i64, scratch_operands = 0 : i64, tpu.core_type = #tpu.core_type<tc>, window_params = [{pipeline_mode = #tpu.pipeline_mode<synchronous>, transform_indices = @transform_0, window_bounds = array<i64: 16, 1024>}, {transform_indices = @transform_1, window_bounds = array<i64: 1024, 512>}, {transform_indices = @transform_2, window_bounds = array<i64: 1, 512>}, {transform_indices = @transform_3, window_bounds = array<i64: 16, 512>}]} {
    %c0 = arith.constant 0 : index
    %c0_0 = arith.constant 0 : index
    %0 = vector.load %arg1[%c0, %c0_0] : memref<16x1024xf32, #tpu.memory_space<vmem>>, vector<16x1024xf32>
    %1 = arith.truncf %0 : vector<16x1024xf32> to vector<16x1024xbf16>
    %c0_1 = arith.constant 0 : index
    %c0_2 = arith.constant 0 : index
    %2 = vector.load %arg2[%c0_1, %c0_2] : memref<1024x512xbf16, #tpu.memory_space<vmem>>, vector<1024x512xbf16>
    %cst = arith.constant dense<0.000000e+00> : vector<16x512xf32>
    %3 = tpu.matmul %1, %2, %cst {dimension_numbers = #tpu.dot_dimension_numbers<[1], [0], [0], [1], [0, 0, 1, 1], [], []>} : vector<16x1024xbf16>, vector<1024x512xbf16>, vector<16x512xf32> -> vector<16x512xf32>
    %c0_3 = arith.constant 0 : index
    %c0_4 = arith.constant 0 : index
    %4 = vector.load %arg3[%c0_3, %c0_4] : memref<1x512xf32, #tpu.memory_space<vmem>>, vector<1x512xf32>
    %5 = vector.broadcast %4 : vector<1x512xf32> to vector<16x512xf32>
    %6 = arith.addf %3, %5 : vector<16x512xf32>
    %c0_5 = arith.constant 0 : index
    %c0_6 = arith.constant 0 : index
    %7 = vector.load %arg4[%c0_5, %c0_6] : memref<16x512xf32, #tpu.memory_space<vmem>>, vector<16x512xf32>
    tpu.vector_store %arg4[%c0_5, %c0_6], %6 {strides = array<i32>} : memref<16x512xf32, #tpu.memory_space<vmem>>, vector<16x512xf32>,
    return
  }
  func.func @transform_0(%arg0: i32) -> (i32, i32) {
    %c0_i32 = arith.constant 0 : i32
    %c0_i32_0 = arith.constant 0 : i32
    %c0_i32_1 = arith.constant 0 : i32
    return %c0_i32, %c0_i32_0 : i32, i32
  }
  func.func @transform_1(%arg0: i32) -> (i32, i32) {
    %c0_i32 = arith.constant 0 : i32
    %c0_i32_0 = arith.constant 0 : i32
    return %c0_i32, %arg0 : i32, i32
  }
  func.func @transform_2(%arg0: i32) -> (i32, i32) {
    %c0_i32 = arith.constant 0 : i32
    %c0_i32_0 = arith.constant 0 : i32
    return %c0_i32, %arg0 : i32, i32
  }
  func.func @transform_3(%arg0: i32) -> (i32, i32) {
    %c0_i32 = arith.constant 0 : i32
    %c0_i32_0 = arith.constant 0 : i32
    return %c0_i32, %arg0 : i32, i32
  }
}

</mosaic_0001>

<bundles_post_ra>
// kernel: estimator_forward.1
= control target key start
LH: loop header
LB: loop body
LE: loop exit
PB: predicated region body
PF: predicated region fallthrough
CT: control target
= control target key end

     0   :  { %8 = vsyncpa [#allocation3], 0  ;;  %s2632_s12 = smov [#allocation2]   ;;  %s2765_s0 = inlined_call_operand.vmem [shape: f32[16,1024], index: 0, kind: input, shape index: {}]   ;;  %s2766_s1 = inlined_call_operand.hbm [shape: bf16[1024,512], index: 1, kind: input, shape index: {}]   ;;  %s2767_s2 = inlined_call_operand.vmem [shape: f32[1,512], index: 2, kind: input, shape index: {}]   ;;  %s2768_s3 = inlined_call_operand.vmem [shape: f32[16,512], index: 3, kind: output, shape index: {}]  }
   0x1   :  { %s16_s13 = sshll.u32 %s2632_s12, 4  ;;  %s17_s13 = int_to_ptr.vmem [resolvable:$true] %s16_s13 }
   0x2   :  { %s2618_s14 = scalar_lea.vmem %s17_s13, 32768  ;;  %p2623_p1 = scmp.lt.s32.totalorder %s17_s13, %s17_s13 }
   0x3   :  { %p2619_p0 = scmp.ne.s32.totalorder %s17_s13, %s2618_s14  ;;  %p2624_p2 = scmp.lt.s32.totalorder %s2618_s14, %s2618_s14 }
   0x5   :  { %p2625_p3 = por %p2624_p2, %p2623_p1 }
   0x7   :  { %p2626_p4 = pnand %p2625_p3, %p2619_p0 }
   0x9   :  { %2629 = shalt.err (!%p2626_p4)
}
   0xa   :  { %s2633_s15 = smov 256   ;;  %s2634_s16 = smov 16  }
   0xb   :  { %22 = dma.hbm_to_vmem [thread:$0]  %s2766_s1, 32768, %s17_s13, [#allocation3], %s2633_s15, %s2633_s15, %s2634_s16  }
   0xc   :  { %2630 = dma.done.wait [#allocation3], 32768  }
   0xd   :  { %2631 = vsyncadd [#allocation3], 4294934528  ;;  %v2226_v0 = vld [vmem:[#allocation2 + $0xe4] ss:$16 sps:$4 sm:$0xff]   ;;  %v2230_v2 = vld [vmem:[#allocation2 + $0xe0] ss:$16 sps:$4 sm:$0xff]  }
   0xe   :  { %v2228_v1 = vld [vmem:[#allocation2 + $0x2e4] ss:$16 sps:$4 sm:$0xff]   ;;  %1610 = vmatprep.subr.bf16.mxu0 %v2226_v0  ;;  %v2231_v3 = vld [vmem:[#allocation2 + $0x2e0] ss:$16 sps:$4 sm:$0xff]   ;;  %v29_v46 = vld [vmem:[%s2765_s0 + $0x8] sm:$0xff] }
   0xf   :  { %1653 = vmatprep.subr.bf16.mxu1 %v2228_v1  ;;  %v2232_v4 = vld [vmem:[#allocation2 + $0xc4] ss:$16 sps:$4 sm:$0xff]   ;;  %1611 = vmatpush1.bf16.msra.mxu0 %v2230_v2  ;;  %v2236_v6 = vld [vmem:[#allocation2 + $0xc0] ss:$16 sps:$4 sm:$0xff]   ;;  %v37_v47 = vld [vmem:[%s2765_s0 + $0x48] sm:$0xff] }
  0x10   :  { %1654 = vmatpush1.bf16.msra.mxu1 %v2231_v3  ;;  %v2234_v5 = vld [vmem:[#allocation2 + $0x2c4] ss:$16 sps:$4 sm:$0xff]   ;;  %1612 = vmatprep.subr.bf16.mxu0 %v2232_v4  ;;  %v2237_v7 = vld [vmem:[#allocation2 + $0x2c0] ss:$16 sps:$4 sm:$0xff]   ;;  %v31_v48 = vld [vmem:[%s2765_s0 + $0x18] sm:$0xff]  ;;  %v2670_v53 = vpack.c.bf16 %v37_v47, %v29_v46 }
  0x11   :  { %1655 = vmatprep.subr.bf16.mxu1 %v2234_v5  ;;  %v2238_v8 = vld [vmem:[#allocation2 + $0xa4] ss:$16 sps:$4 sm:$0xff]   ;;  %v2242_v10 = vld [vmem:[#allocation2 + $0xa0] ss:$16 sps:$4 sm:$0xff]   ;;  %v39_v49 = vld [vmem:[%s2765_s0 + $0x58] sm:$0xff] }
  0x12   :  { %v2240_v9 = vld [vmem:[#allocation2 + $0x2a4] ss:$16 sps:$4 sm:$0xff]   ;;  %v2243_v11 = vld [vmem:[#allocation2 + $0x2a0] ss:$16 sps:$4 sm:$0xff]   ;;  %v2672_v54 = vpack.c.bf16 %v39_v49, %v31_v48  ;;  %1642 = vmatprep.mubr.bf16.mxu0 %v2670_v53  ;;  %v43_v46 = vld [vmem:[%s2765_s0 + $0x78] sm:$0xff] }
  0x13   :  { %1613 = vmatpush1.bf16.msra.mxu0 %v2236_v6  ;;  %v2244_v12 = vld [vmem:[#allocation2 + $0x84] ss:$16 sps:$4 sm:$0xff]   ;;  %v2248_v14 = vld [vmem:[#allocation2 + $0x80] ss:$16 sps:$4 sm:$0xff]  }
  0x14   :  { %1656 = vmatpush1.bf16.msra.mxu1 %v2237_v7  ;;  %1614 = vmatprep.subr.bf16.mxu0 %v2238_v8  ;;  %v2246_v13 = vld [vmem:[#allocation2 + $0x284] ss:$16 sps:$4 sm:$0xff]   ;;  %v2249_v15 = vld [vmem:[#allocation2 + $0x280] ss:$16 sps:$4 sm:$0xff]  }
  0x15   :  { %1657 = vmatprep.subr.bf16.mxu1 %v2240_v9  ;;  %v2250_v16 = vld [vmem:[#allocation2 + $0x64] ss:$16 sps:$4 sm:$0xff]   ;;  %v2254_v18 = vld [vmem:[#allocation2 + $0x60] ss:$16 sps:$4 sm:$0xff]   ;;  %1685 = vmatprep.mubr.bf16.mxu1 %v2672_v54 }
  0x16   :  { %v2252_v17 = vld [vmem:[#allocation2 + $0x264] ss:$16 sps:$4 sm:$0xff]   ;;  %v2255_v19 = vld [vmem:[#allocation2 + $0x260] ss:$16 sps:$4 sm:$0xff]  }
  0x17   :  { %1615 = vmatpush1.bf16.msra.mxu0 %v2242_v10  ;;  %v2256_v20 = vld [vmem:[#allocation2 + $0x44] ss:$16 sps:$4 sm:$0xff]   ;;  %v2260_v22 = vld [vmem:[#allocation2 + $0x40] ss:$16 sps:$4 sm:$0xff]  }
  0x18   :  { %1658 = vmatpush1.bf16.msra.mxu1 %v2243_v11  ;;  %1616 = vmatprep.subr.bf16.mxu0 %v2244_v12  ;;  %v2258_v21 = vld [vmem:[#allocation2 + $0x244] ss:$16 sps:$4 sm:$0xff]   ;;  %v2261_v23 = vld [vmem:[#allocation2 + $0x240] ss:$16 sps:$4 sm:$0xff]  }
  0x19   :  { %1659 = vmatprep.subr.bf16.mxu1 %v2246_v13  ;;  %v2262_v24 = vld [vmem:[#allocation2 + $0x24] ss:$16 sps:$4 sm:$0xff]   ;;  %v2266_v26 = vld [vmem:[#allocation2 + $0x20] ss:$16 sps:$4 sm:$0xff]  }
  0x1a   :  { %v2264_v25 = vld [vmem:[#allocation2 + $0x224] ss:$16 sps:$4 sm:$0xff]   ;;  %v2267_v27 = vld [vmem:[#allocation2 + $0x220] ss:$16 sps:$4 sm:$0xff]  }
  0x1b   :  { %1617 = vmatpush1.bf16.msra.mxu0 %v2248_v14  ;;  %v2268_v28 = vld [vmem:[#allocation2 + $0x4] ss:$16 sps:$4 sm:$0xff]   ;;  %v2272_v30 = vld [vmem:[#allocation2] ss:$16 sps:$4 sm:$0xff]  }
  0x1c   :  { %1660 = vmatpush1.bf16.msra.mxu1 %v2249_v15  ;;  %1618 = vmatprep.subr.bf16.mxu0 %v2250_v16  ;;  %v2270_v29 = vld [vmem:[#allocation2 + $0x204] ss:$16 sps:$4 sm:$0xff]   ;;  %v2273_v31 = vld [vmem:[#allocation2 + $0x200] ss:$16 sps:$4 sm:$0xff]  }
  0x1d   :  { %1661 = vmatprep.subr.bf16.mxu1 %v2252_v17  ;;  %v2274_v32 = vld [vmem:[#allocation2 + $0x1e4] ss:$16 sps:$4 sm:$0xff]   ;;  %v2278_v34 = vld [vmem:[#allocation2 + $0x1e0] ss:$16 sps:$4 sm:$0xff]  }
  0x1e   :  { %v2276_v33 = vld [vmem:[#allocation2 + $0x3e4] ss:$16 sps:$4 sm:$0xff]   ;;  %v2279_v35 = vld [vmem:[#allocation2 + $0x3e0] ss:$16 sps:$4 sm:$0xff]  }
  0x1f   :  { %1619 = vmatpush1.bf16.msra.mxu0 %v2254_v18  ;;  %v2280_v36 = vld [vmem:[#allocation2 + $0x1c4] ss:$16 sps:$4 sm:$0xff]   ;;  %v2284_v38 = vld [vmem:[#allocation2 + $0x1c0] ss:$16 sps:$4 sm:$0xff]  }
  0x20   :  { %1662 = vmatpush1.bf16.msra.mxu1 %v2255_v19  ;;  %1620 = vmatprep.subr.bf16.mxu0 %v2256_v20  ;;  %v2282_v37 = vld [vmem:[#allocation2 + $0x3c4] ss:$16 sps:$4 sm:$0xff]   ;;  %v2285_v39 = vld [vmem:[#allocation2 + $0x3c0] ss:$16 sps:$4 sm:$0xff]  }
  0x21   :  { %1663 = vmatprep.subr.bf16.mxu1 %v2258_v21  ;;  %v2286_v40 = vld [vmem:[#allocation2 + $0x1a4] ss:$16 sps:$4 sm:$0xff]   ;;  %v2290_v42 = vld [vmem:[#allocation2 + $0x1a0] ss:$16 sps:$4 sm:$0xff]  }
  0x22   :  { %v2288_v41 = vld [vmem:[#allocation2 + $0x3a4] ss:$16 sps:$4 sm:$0xff]   ;;  %v2291_v43 = vld [vmem:[#allocation2 + $0x3a0] ss:$16 sps:$4 sm:$0xff]  }
  0x23   :  { %1621 = vmatpush1.bf16.msra.mxu0 %v2260_v22  ;;  %v2292_v44 = vld [vmem:[#allocation2 + $0x184] ss:$16 sps:$4 sm:$0xff]   ;;  %v2296_v50 = vld [vmem:[#allocation2 + $0x180] ss:$16 sps:$4 sm:$0xff]  }
  0x24   :  { %1664 = vmatpush1.bf16.msra.mxu1 %v2261_v23  ;;  %1622 = vmatprep.subr.bf16.mxu0 %v2262_v24  ;;  %v2294_v45 = vld [vmem:[#allocation2 + $0x384] ss:$16 sps:$4 sm:$0xff]   ;;  %v2297_v51 = vld [vmem:[#allocation2 + $0x380] ss:$16 sps:$4 sm:$0xff]  }
  0x25   :  { %1665 = vmatprep.subr.bf16.mxu1 %v2264_v25  ;;  %v2298_v52 = vld [vmem:[#allocation2 + $0x164] ss:$16 sps:$4 sm:$0xff]   ;;  %v2302_v56 = vld [vmem:[#allocation2 + $0x160] ss:$16 sps:$4 sm:$0xff]  }
  0x26   :  { %v2300_v55 = vld [vmem:[#allocation2 + $0x364] ss:$16 sps:$4 sm:$0xff]   ;;  %v2303_v57 = vld [vmem:[#allocation2 + $0x360] ss:$16 sps:$4 sm:$0xff]  }
  0x27   :  { %1623 = vmatpush1.bf16.msra.mxu0 %v2266_v26  ;;  %v2304_v58 = vld [vmem:[#allocation2 + $0x144] ss:$16 sps:$4 sm:$0xff]   ;;  %v2308_v60 = vld [vmem:[#allocation2 + $0x140] ss:$16 sps:$4 sm:$0xff]  }
  0x28   :  { %1666 = vmatpush1.bf16.msra.mxu1 %v2267_v27  ;;  %1624 = vmatprep.subr.bf16.mxu0 %v2268_v28  ;;  %v2306_v59 = vld [vmem:[#allocation2 + $0x344] ss:$16 sps:$4 sm:$0xff]   ;;  %v2309_v61 = vld [vmem:[#allocation2 + $0x340] ss:$16 sps:$4 sm:$0xff]  }
  0x29   :  { %1667 = vmatprep.subr.bf16.mxu1 %v2270_v29  ;;  %v2310_v62 = vld [vmem:[#allocation2 + $0x124] ss:$16 sps:$4 sm:$0xff]   ;;  %v2314_v0 = vld [vmem:[#allocation2 + $0x120] ss:$16 sps:$4 sm:$0xff]  }
  0x2a   :  { %v2312_v63 = vld [vmem:[#allocation2 + $0x324] ss:$16 sps:$4 sm:$0xff]   ;;  %v2315_v1 = vld [vmem:[#allocation2 + $0x320] ss:$16 sps:$4 sm:$0xff]  }
  0x2b   :  { %1625 = vmatpush1.bf16.msra.mxu0 %v2272_v30  ;;  %v2316_v2 = vld [vmem:[#allocation2 + $0x104] ss:$16 sps:$4 sm:$0xff]   ;;  %v2320_v4 = vld [vmem:[#allocation2 + $0x100] ss:$16 sps:$4 sm:$0xff]  }
  0x2c   :  { %1668 = vmatpush1.bf16.msra.mxu1 %v2273_v31  ;;  %1626 = vmatprep.subr.bf16.mxu0 %v2274_v32  ;;  %v2318_v3 = vld [vmem:[#allocation2 + $0x304] ss:$16 sps:$4 sm:$0xff]   ;;  %v2321_v5 = vld [vmem:[#allocation2 + $0x300] ss:$16 sps:$4 sm:$0xff]  }
  0x2d   :  { %1669 = vmatprep.subr.bf16.mxu1 %v2276_v33  ;;  %v28_v6 = vld [vmem:[%s2765_s0] sm:$0xff]  ;;  %v30_v8 = vld [vmem:[%s2765_s0 + $0x10] sm:$0xff] }
  0x2e   :  { %v36_v7 = vld [vmem:[%s2765_s0 + $0x40] sm:$0xff]  ;;  %v38_v9 = vld [vmem:[%s2765_s0 + $0x50] sm:$0xff] }
  0x2f   :  { %1627 = vmatpush2.bf16.msra.mxu0 %v2278_v34  ;;  %v2324_v10 = vld [vmem:[#allocation2 + $0x4e4] ss:$16 sps:$4 sm:$0xff]   ;;  %v2688_v12 = vpack.c.bf16 %v36_v7, %v28_v6  ;;  %v2690_v13 = vpack.c.bf16 %v38_v9, %v30_v8  ;;  %v2322_v14 = vld [vmem:[#allocation2 + $0x4e0] ss:$16 sps:$4 sm:$0xff]  }
  0x30   :  { %1670 = vmatpush2.bf16.msra.mxu1 %v2279_v35  ;;  %1628 = vmatprep.subr.bf16.mxu0 %v2280_v36  ;;  %v2327_v11 = vld [vmem:[#allocation2 + $0x6e4] ss:$16 sps:$4 sm:$0xff]   ;;  %v2325_v15 = vld [vmem:[#allocation2 + $0x6e0] ss:$16 sps:$4 sm:$0xff]  }
  0x31   :  { %1671 = vmatprep.subr.bf16.mxu1 %v2282_v37  ;;  %v2330_v16 = vld [vmem:[#allocation2 + $0x4c4] ss:$16 sps:$4 sm:$0xff]   ;;  %v2328_v18 = vld [vmem:[#allocation2 + $0x4c0] ss:$16 sps:$4 sm:$0xff]  }
  0x32   :  { %v2333_v17 = vld [vmem:[#allocation2 + $0x6c4] ss:$16 sps:$4 sm:$0xff]   ;;  %v2331_v19 = vld [vmem:[#allocation2 + $0x6c0] ss:$16 sps:$4 sm:$0xff]  }
  0x33   :  { %1629 = vmatpush2.bf16.msra.mxu0 %v2284_v38  ;;  %v2336_v20 = vld [vmem:[#allocation2 + $0x4a4] ss:$16 sps:$4 sm:$0xff]   ;;  %v2334_v22 = vld [vmem:[#allocation2 + $0x4a0] ss:$16 sps:$4 sm:$0xff]  }
  0x34   :  { %1672 = vmatpush2.bf16.msra.mxu1 %v2285_v39  ;;  %1630 = vmatprep.subr.bf16.mxu0 %v2286_v40  ;;  %v2339_v21 = vld [vmem:[#allocation2 + $0x6a4] ss:$16 sps:$4 sm:$0xff]   ;;  %v2337_v23 = vld [vmem:[#allocation2 + $0x6a0] ss:$16 sps:$4 sm:$0xff]   ;;  %v33_v40 = vld [vmem:[%s2765_s0 + $0x28] sm:$0xff] }
  0x35   :  { %1673 = vmatprep.subr.bf16.mxu1 %v2288_v41  ;;  %v2342_v24 = vld [vmem:[#allocation2 + $0x484] ss:$16 sps:$4 sm:$0xff]   ;;  %v2340_v26 = vld [vmem:[#allocation2 + $0x480] ss:$16 sps:$4 sm:$0xff]   ;;  %v41_v41 = vld [vmem:[%s2765_s0 + $0x68] sm:$0xff] }
  0x36   :  { %v2345_v25 = vld [vmem:[#allocation2 + $0x684] ss:$16 sps:$4 sm:$0xff]   ;;  %v2343_v27 = vld [vmem:[#allocation2 + $0x680] ss:$16 sps:$4 sm:$0xff]  }
  0x37   :  { %1631 = vmatpush2.bf16.msra.mxu0 %v2290_v42  ;;  %v2348_v28 = vld [vmem:[#allocation2 + $0x464] ss:$16 sps:$4 sm:$0xff]   ;;  %v2346_v30 = vld [vmem:[#allocation2 + $0x460] ss:$16 sps:$4 sm:$0xff]   ;;  %v35_v42 = vld [vmem:[%s2765_s0 + $0x38] sm:$0xff] }
  0x38   :  { %1674 = vmatpush2.bf16.msra.mxu1 %v2291_v43  ;;  %1632 = vmatprep.subr.bf16.mxu0 %v2292_v44  ;;  %v2351_v29 = vld [vmem:[#allocation2 + $0x664] ss:$16 sps:$4 sm:$0xff]   ;;  %v2349_v31 = vld [vmem:[#allocation2 + $0x660] ss:$16 sps:$4 sm:$0xff]   ;;  %v2708_v47 = vpack.c.bf16 %v43_v46, %v35_v42  ;;  %v2436_v42 = vld [vmem:[#allocation2 + $0x88] ss:$16 sps:$4 sm:$0xff]  }
  0x39   :  { %1675 = vmatprep.subr.bf16.mxu1 %v2294_v45  ;;  %v2354_v32 = vld [vmem:[#allocation2 + $0x444] ss:$16 sps:$4 sm:$0xff]   ;;  %v2352_v34 = vld [vmem:[#allocation2 + $0x440] ss:$16 sps:$4 sm:$0xff]   ;;  %v2703_v45 = vpack.c.bf16 %v41_v41, %v33_v40  ;;  %v2438_v40 = vld [vmem:[#allocation2 + $0x8c] ss:$16 sps:$4 sm:$0xff]  }
  0x3a   :  { %v2357_v33 = vld [vmem:[#allocation2 + $0x644] ss:$16 sps:$4 sm:$0xff]   ;;  %v2355_v35 = vld [vmem:[#allocation2 + $0x640] ss:$16 sps:$4 sm:$0xff]   ;;  %v2441_v41 = vld [vmem:[#allocation2 + $0x28c] ss:$16 sps:$4 sm:$0xff]  }
  0x3b   :  { %1633 = vmatpush2.bf16.msra.mxu0 %v2296_v50  ;;  %v2360_v36 = vld [vmem:[#allocation2 + $0x424] ss:$16 sps:$4 sm:$0xff]   ;;  %v2358_v38 = vld [vmem:[#allocation2 + $0x420] ss:$16 sps:$4 sm:$0xff]   ;;  %v2447_v46 = vld [vmem:[#allocation2 + $0x26c] ss:$16 sps:$4 sm:$0xff]  }
  0x3c   :  { %1676 = vmatpush2.bf16.msra.mxu1 %v2297_v51  ;;  %1634 = vmatprep.subr.bf16.mxu0 %v2298_v52  ;;  %v2363_v37 = vld [vmem:[#allocation2 + $0x624] ss:$16 sps:$4 sm:$0xff]   ;;  %v2361_v39 = vld [vmem:[#allocation2 + $0x620] ss:$16 sps:$4 sm:$0xff]  }
  0x3d   :  { %1677 = vmatprep.subr.bf16.mxu1 %v2300_v55  ;;  %v2366_v43 = vld [vmem:[#allocation2 + $0x404] ss:$16 sps:$4 sm:$0xff]   ;;  %v2364_v48 = vld [vmem:[#allocation2 + $0x400] ss:$16 sps:$4 sm:$0xff]  }
  0x3e   :  { %v2369_v44 = vld [vmem:[#allocation2 + $0x604] ss:$16 sps:$4 sm:$0xff]   ;;  %v2367_v49 = vld [vmem:[#allocation2 + $0x600] ss:$16 sps:$4 sm:$0xff]  }
  0x3f   :  { %1635 = vmatpush2.bf16.msra.mxu0 %v2302_v56  ;;  %v2372_v50 = vld [vmem:[#allocation2 + $0x5e4] ss:$16 sps:$4 sm:$0xff]   ;;  %v2370_v52 = vld [vmem:[#allocation2 + $0x5e0] ss:$16 sps:$4 sm:$0xff]  }
  0x40   :  { %1678 = vmatpush2.bf16.msra.mxu1 %v2303_v57  ;;  %1636 = vmatprep.subr.bf16.mxu0 %v2304_v58  ;;  %v2375_v51 = vld [vmem:[#allocation2 + $0x7e4] ss:$16 sps:$4 sm:$0xff]   ;;  %v2373_v55 = vld [vmem:[#allocation2 + $0x7e0] ss:$16 sps:$4 sm:$0xff]  }
  0x41   :  { %1679 = vmatprep.subr.bf16.mxu1 %v2306_v59  ;;  %v2378_v56 = vld [vmem:[#allocation2 + $0x5c4] ss:$16 sps:$4 sm:$0xff]   ;;  %v2376_v58 = vld [vmem:[#allocation2 + $0x5c0] ss:$16 sps:$4 sm:$0xff]  }
  0x42   :  { %v2381_v57 = vld [vmem:[#allocation2 + $0x7c4] ss:$16 sps:$4 sm:$0xff]   ;;  %v2379_v59 = vld [vmem:[#allocation2 + $0x7c0] ss:$16 sps:$4 sm:$0xff]  }
  0x43   :  { %1637 = vmatpush2.bf16.msra.mxu0 %v2308_v60  ;;  %v2384_v60 = vld [vmem:[#allocation2 + $0x5a4] ss:$16 sps:$4 sm:$0xff]   ;;  %v2394_v6 = vld [vmem:[#allocation2 + $0x560] ss:$16 sps:$4 sm:$0xff]  }
  0x44   :  { %1680 = vmatpush2.bf16.msra.mxu1 %v2309_v61  ;;  %1638 = vmatprep.subr.bf16.mxu0 %v2310_v62  ;;  %v2387_v61 = vld [vmem:[#allocation2 + $0x7a4] ss:$16 sps:$4 sm:$0xff]   ;;  %v2382_v62 = vld [vmem:[#allocation2 + $0x5a0] ss:$16 sps:$4 sm:$0xff]  }
  0x45   :  { %1681 = vmatprep.subr.bf16.mxu1 %v2312_v63  ;;  %v2385_v63 = vld [vmem:[#allocation2 + $0x7a0] ss:$16 sps:$4 sm:$0xff]   ;;  %v2402_v8 = vld [vmem:[#allocation2 + $0x544] ss:$16 sps:$4 sm:$0xff]  }
  0x46   :  { %v2397_v7 = vld [vmem:[#allocation2 + $0x760] ss:$16 sps:$4 sm:$0xff]   ;;  %v2405_v9 = vld [vmem:[#allocation2 + $0x744] ss:$16 sps:$4 sm:$0xff]  }
  0x47   :  { %1639 = vmatpush2.bf16.msra.mxu0 %v2314_v0  ;;  %v2390_v0 = vld [vmem:[#allocation2 + $0x584] ss:$16 sps:$4 sm:$0xff]  }
  0x48   :  { %1682 = vmatpush2.bf16.msra.mxu1 %v2315_v1  ;;  %1640 = vmatprep.subr.bf16.mxu0 %v2316_v2  ;;  %v2393_v1 = vld [vmem:[#allocation2 + $0x784] ss:$16 sps:$4 sm:$0xff]   ;;  %v2388_v2 = vld [vmem:[#allocation2 + $0x580] ss:$16 sps:$4 sm:$0xff]  }
  0x49   :  { %1683 = vmatprep.subr.bf16.mxu1 %v2318_v3  ;;  %v2391_v3 = vld [vmem:[#allocation2 + $0x780] ss:$16 sps:$4 sm:$0xff]  }
  0x4b   :  { %1641 = vmatpush2.bf16.msra.mxu0 %v2320_v4  ;;  %v2396_v4 = vld [vmem:[#allocation2 + $0x564] ss:$16 sps:$4 sm:$0xff]  }
  0x4c   :  { %1684 = vmatpush2.bf16.msra.mxu1 %v2321_v5  ;;  %1696 = vmatprep.subr.bf16.mxu0 %v2324_v10  ;;  %v2399_v5 = vld [vmem:[#allocation2 + $0x764] ss:$16 sps:$4 sm:$0xff]   ;;  %v2400_v10 = vld [vmem:[#allocation2 + $0x540] ss:$16 sps:$4 sm:$0xff]  }
  0x4d   :  { %1739 = vmatprep.subr.bf16.mxu1 %v2327_v11  ;;  %v2403_v11 = vld [vmem:[#allocation2 + $0x740] ss:$16 sps:$4 sm:$0xff]  }
  0x4e   :  { %1643 = vmatmul.mubr.bf16.vlgmr.msra.gmra.mxu0 %v2688_v12 }
  0x4f   :  { %1686 = vmatmul.mubr.bf16.vlgmr.msra.gmra.mxu1 %v2690_v13  ;;  %1697 = vmatpush1.bf16.msra.mxu0 %v2322_v14  ;;  %v2408_v14 = vld [vmem:[#allocation2 + $0x524] ss:$16 sps:$4 sm:$0xff]  }
  0x50   :  { %1740 = vmatpush1.bf16.msra.mxu1 %v2325_v15  ;;  %1698 = vmatprep.subr.bf16.mxu0 %v2330_v16  ;;  %v2411_v15 = vld [vmem:[#allocation2 + $0x724] ss:$16 sps:$4 sm:$0xff]   ;;  %v2406_v16 = vld [vmem:[#allocation2 + $0x520] ss:$16 sps:$4 sm:$0xff]  }
  0x51   :  { %1741 = vmatprep.subr.bf16.mxu1 %v2333_v17  ;;  %1728 = vmatprep.mubr.bf16.mxu0 %v2703_v45  ;;  %v2409_v17 = vld [vmem:[#allocation2 + $0x720] ss:$16 sps:$4 sm:$0xff]  }
  0x52   :  { %1771 = vmatprep.mubr.bf16.mxu1 %v2708_v47 }
  0x53   :  { %1699 = vmatpush1.bf16.msra.mxu0 %v2328_v18  ;;  %v2414_v18 = vld [vmem:[#allocation2 + $0x504] ss:$16 sps:$4 sm:$0xff]  }
  0x54   :  { %1742 = vmatpush1.bf16.msra.mxu1 %v2331_v19  ;;  %1700 = vmatprep.subr.bf16.mxu0 %v2336_v20  ;;  %v2417_v19 = vld [vmem:[#allocation2 + $0x704] ss:$16 sps:$4 sm:$0xff]   ;;  %v2412_v20 = vld [vmem:[#allocation2 + $0x500] ss:$16 sps:$4 sm:$0xff]  }
  0x55   :  { %1743 = vmatprep.subr.bf16.mxu1 %v2339_v21  ;;  %v2415_v21 = vld [vmem:[#allocation2 + $0x700] ss:$16 sps:$4 sm:$0xff]  }
  0x57   :  { %1701 = vmatpush1.bf16.msra.mxu0 %v2334_v22  ;;  %v32_v22 = vld [vmem:[%s2765_s0 + $0x20] sm:$0xff] }
  0x58   :  { %1744 = vmatpush1.bf16.msra.mxu1 %v2337_v23  ;;  %1702 = vmatprep.subr.bf16.mxu0 %v2342_v24  ;;  %v40_v23 = vld [vmem:[%s2765_s0 + $0x60] sm:$0xff]  ;;  %v34_v24 = vld [vmem:[%s2765_s0 + $0x30] sm:$0xff] }
  0x59   :  { %1745 = vmatprep.subr.bf16.mxu1 %v2345_v25  ;;  %v42_v25 = vld [vmem:[%s2765_s0 + $0x70] sm:$0xff] }
  0x5b   :  { %1703 = vmatpush1.bf16.msra.mxu0 %v2340_v26  ;;  %v2420_v26 = vld [vmem:[#allocation2 + $0xec] ss:$16 sps:$4 sm:$0xff]  }
  0x5c   :  { %1746 = vmatpush1.bf16.msra.mxu1 %v2343_v27  ;;  %1704 = vmatprep.subr.bf16.mxu0 %v2348_v28  ;;  %v2423_v27 = vld [vmem:[#allocation2 + $0x2ec] ss:$16 sps:$4 sm:$0xff]   ;;  %v2724_v28 = vpack.c.bf16 %v40_v23, %v32_v22  ;;  %v2496_v22 = vld [vmem:[#allocation2 + $0x148] ss:$16 sps:$4 sm:$0xff]  }
  0x5d   :  { %1747 = vmatprep.subr.bf16.mxu1 %v2351_v29  ;;  %v2726_v29 = vpack.c.bf16 %v42_v25, %v34_v24  ;;  %v2499_v23 = vld [vmem:[#allocation2 + $0x348] ss:$16 sps:$4 sm:$0xff]   ;;  %v2504_v24 = vld [vmem:[#allocation2 + $0x12c] ss:$16 sps:$4 sm:$0xff]  }
  0x5e   :  { %v2507_v25 = vld [vmem:[#allocation2 + $0x32c] ss:$16 sps:$4 sm:$0xff]  }
  0x5f   :  { %1705 = vmatpush1.bf16.msra.mxu0 %v2346_v30  ;;  %v2418_v30 = vld [vmem:[#allocation2 + $0xe8] ss:$16 sps:$4 sm:$0xff]  }
  0x60   :  { %1748 = vmatpush1.bf16.msra.mxu1 %v2349_v31  ;;  %1706 = vmatprep.subr.bf16.mxu0 %v2354_v32  ;;  %v2421_v31 = vld [vmem:[#allocation2 + $0x2e8] ss:$16 sps:$4 sm:$0xff]   ;;  %v2426_v32 = vld [vmem:[#allocation2 + $0xcc] ss:$16 sps:$4 sm:$0xff]  }
  0x61   :  { %1749 = vmatprep.subr.bf16.mxu1 %v2357_v33  ;;  %v2429_v33 = vld [vmem:[#allocation2 + $0x2cc] ss:$16 sps:$4 sm:$0xff]  }
  0x63   :  { %1707 = vmatpush1.bf16.msra.mxu0 %v2352_v34  ;;  %v2424_v34 = vld [vmem:[#allocation2 + $0xc8] ss:$16 sps:$4 sm:$0xff]  }
  0x64   :  { %1750 = vmatpush1.bf16.msra.mxu1 %v2355_v35  ;;  %1708 = vmatprep.subr.bf16.mxu0 %v2360_v36  ;;  %v2427_v35 = vld [vmem:[#allocation2 + $0x2c8] ss:$16 sps:$4 sm:$0xff]   ;;  %v2432_v36 = vld [vmem:[#allocation2 + $0xac] ss:$16 sps:$4 sm:$0xff]  }
  0x65   :  { %1751 = vmatprep.subr.bf16.mxu1 %v2363_v37  ;;  %v2435_v37 = vld [vmem:[#allocation2 + $0x2ac] ss:$16 sps:$4 sm:$0xff]  }
  0x67   :  { %1709 = vmatpush1.bf16.msra.mxu0 %v2358_v38  ;;  %v2430_v38 = vld [vmem:[#allocation2 + $0xa8] ss:$16 sps:$4 sm:$0xff]  }
  0x68   :  { %1752 = vmatpush1.bf16.msra.mxu1 %v2361_v39  ;;  %1710 = vmatprep.subr.bf16.mxu0 %v2366_v43  ;;  %v2433_v39 = vld [vmem:[#allocation2 + $0x2a8] ss:$16 sps:$4 sm:$0xff]  }
  0x69   :  { %1753 = vmatprep.subr.bf16.mxu1 %v2369_v44  ;;  %v2439_v43 = vld [vmem:[#allocation2 + $0x288] ss:$16 sps:$4 sm:$0xff]   ;;  %v2444_v44 = vld [vmem:[#allocation2 + $0x6c] ss:$16 sps:$4 sm:$0xff]  }
  0x6b   :  { %1711 = vmatpush1.bf16.msra.mxu0 %v2364_v48  ;;  %v2442_v48 = vld [vmem:[#allocation2 + $0x68] ss:$16 sps:$4 sm:$0xff]  }
  0x6c   :  { %1754 = vmatpush1.bf16.msra.mxu1 %v2367_v49  ;;  %1712 = vmatprep.subr.bf16.mxu0 %v2372_v50  ;;  %v2453_v49 = vld [vmem:[#allocation2 + $0x24c] ss:$16 sps:$4 sm:$0xff]   ;;  %v2448_v50 = vld [vmem:[#allocation2 + $0x48] ss:$16 sps:$4 sm:$0xff]  }
  0x6d   :  { %1755 = vmatprep.subr.bf16.mxu1 %v2375_v51  ;;  %v2451_v51 = vld [vmem:[#allocation2 + $0x248] ss:$16 sps:$4 sm:$0xff]  }
  0x6f   :  { %1713 = vmatpush2.bf16.msra.mxu0 %v2370_v52  ;;  %v2456_v52 = vld [vmem:[#allocation2 + $0x2c] ss:$16 sps:$4 sm:$0xff]  }
  0x70   :  { %1756 = vmatpush2.bf16.msra.mxu1 %v2373_v55  ;;  %1714 = vmatprep.subr.bf16.mxu0 %v2378_v56  ;;  %v2459_v55 = vld [vmem:[#allocation2 + $0x22c] ss:$16 sps:$4 sm:$0xff]   ;;  %v2454_v56 = vld [vmem:[#allocation2 + $0x28] ss:$16 sps:$4 sm:$0xff]  }
  0x71   :  { %1757 = vmatprep.subr.bf16.mxu1 %v2381_v57  ;;  %v2457_v57 = vld [vmem:[#allocation2 + $0x228] ss:$16 sps:$4 sm:$0xff]  }
  0x73   :  { %1715 = vmatpush2.bf16.msra.mxu0 %v2376_v58  ;;  %v2462_v58 = vld [vmem:[#allocation2 + $0xc] ss:$16 sps:$4 sm:$0xff]  }
  0x74   :  { %1758 = vmatpush2.bf16.msra.mxu1 %v2379_v59  ;;  %1716 = vmatprep.subr.bf16.mxu0 %v2384_v60  ;;  %v2465_v59 = vld [vmem:[#allocation2 + $0x20c] ss:$16 sps:$4 sm:$0xff]   ;;  %v2460_v60 = vld [vmem:[#allocation2 + $0x8] ss:$16 sps:$4 sm:$0xff]  }
  0x75   :  { %1759 = vmatprep.subr.bf16.mxu1 %v2387_v61  ;;  %v2463_v61 = vld [vmem:[#allocation2 + $0x208] ss:$16 sps:$4 sm:$0xff]  }
  0x77   :  { %1717 = vmatpush2.bf16.msra.mxu0 %v2382_v62  ;;  %v2468_v62 = vld [vmem:[#allocation2 + $0x1ec] ss:$16 sps:$4 sm:$0xff]  }
  0x78   :  { %1760 = vmatpush2.bf16.msra.mxu1 %v2385_v63  ;;  %1718 = vmatprep.subr.bf16.mxu0 %v2390_v0  ;;  %v2471_v63 = vld [vmem:[#allocation2 + $0x3ec] ss:$16 sps:$4 sm:$0xff]   ;;  %v2466_v0 = vld [vmem:[#allocation2 + $0x1e8] ss:$16 sps:$4 sm:$0xff]  }
  0x79   :  { %1761 = vmatprep.subr.bf16.mxu1 %v2393_v1  ;;  %v2469_v1 = vld [vmem:[#allocation2 + $0x3e8] ss:$16 sps:$4 sm:$0xff]  }
  0x7b   :  { %1719 = vmatpush2.bf16.msra.mxu0 %v2388_v2  ;;  %v2474_v2 = vld [vmem:[#allocation2 + $0x1cc] ss:$16 sps:$4 sm:$0xff]  }
  0x7c   :  { %1762 = vmatpush2.bf16.msra.mxu1 %v2391_v3  ;;  %1720 = vmatprep.subr.bf16.mxu0 %v2396_v4  ;;  %v2477_v3 = vld [vmem:[#allocation2 + $0x3cc] ss:$16 sps:$4 sm:$0xff]   ;;  %v2472_v4 = vld [vmem:[#allocation2 + $0x1c8] ss:$16 sps:$4 sm:$0xff]  }
  0x7d   :  { %1763 = vmatprep.subr.bf16.mxu1 %v2399_v5  ;;  %v2475_v5 = vld [vmem:[#allocation2 + $0x3c8] ss:$16 sps:$4 sm:$0xff]  }
  0x7f   :  { %1721 = vmatpush2.bf16.msra.mxu0 %v2394_v6  ;;  %v2480_v6 = vld [vmem:[#allocation2 + $0x1ac] ss:$16 sps:$4 sm:$0xff]  }
  0x80   :  { %1764 = vmatpush2.bf16.msra.mxu1 %v2397_v7  ;;  %1722 = vmatprep.subr.bf16.mxu0 %v2402_v8  ;;  %v2483_v7 = vld [vmem:[#allocation2 + $0x3ac] ss:$16 sps:$4 sm:$0xff]   ;;  %v2478_v8 = vld [vmem:[#allocation2 + $0x1a8] ss:$16 sps:$4 sm:$0xff]  }
  0x81   :  { %1765 = vmatprep.subr.bf16.mxu1 %v2405_v9  ;;  %v2481_v9 = vld [vmem:[#allocation2 + $0x3a8] ss:$16 sps:$4 sm:$0xff]  }
  0x83   :  { %1723 = vmatpush2.bf16.msra.mxu0 %v2400_v10  ;;  %v2486_v10 = vld [vmem:[#allocation2 + $0x18c] ss:$16 sps:$4 sm:$0xff]  }
  0x84   :  { %1766 = vmatpush2.bf16.msra.mxu1 %v2403_v11  ;;  %1724 = vmatprep.subr.bf16.mxu0 %v2408_v14  ;;  %v2489_v11 = vld [vmem:[#allocation2 + $0x38c] ss:$16 sps:$4 sm:$0xff]   ;;  %v2484_v14 = vld [vmem:[#allocation2 + $0x188] ss:$16 sps:$4 sm:$0xff]  }
  0x85   :  { %1767 = vmatprep.subr.bf16.mxu1 %v2411_v15  ;;  %v2487_v15 = vld [vmem:[#allocation2 + $0x388] ss:$16 sps:$4 sm:$0xff]  }
  0x87   :  { %1725 = vmatpush2.bf16.msra.mxu0 %v2406_v16  ;;  %v2492_v16 = vld [vmem:[#allocation2 + $0x16c] ss:$16 sps:$4 sm:$0xff]  }
  0x88   :  { %1768 = vmatpush2.bf16.msra.mxu1 %v2409_v17  ;;  %1726 = vmatprep.subr.bf16.mxu0 %v2414_v18  ;;  %v2495_v17 = vld [vmem:[#allocation2 + $0x36c] ss:$16 sps:$4 sm:$0xff]   ;;  %v2490_v18 = vld [vmem:[#allocation2 + $0x168] ss:$16 sps:$4 sm:$0xff]  }
  0x89   :  { %1769 = vmatprep.subr.bf16.mxu1 %v2417_v19  ;;  %v2493_v19 = vld [vmem:[#allocation2 + $0x368] ss:$16 sps:$4 sm:$0xff]  }
  0x8b   :  { %1727 = vmatpush2.bf16.msra.mxu0 %v2412_v20  ;;  %v2498_v20 = vld [vmem:[#allocation2 + $0x14c] ss:$16 sps:$4 sm:$0xff]  }
  0x8c   :  { %1770 = vmatpush2.bf16.msra.mxu1 %v2415_v21  ;;  %1782 = vmatprep.subr.bf16.mxu0 %v2420_v26  ;;  %v2501_v21 = vld [vmem:[#allocation2 + $0x34c] ss:$16 sps:$4 sm:$0xff]   ;;  %v2502_v26 = vld [vmem:[#allocation2 + $0x128] ss:$16 sps:$4 sm:$0xff]  }
  0x8d   :  { %1825 = vmatprep.subr.bf16.mxu1 %v2423_v27  ;;  %v2505_v27 = vld [vmem:[#allocation2 + $0x328] ss:$16 sps:$4 sm:$0xff]  }
  0x8e   :  { %1729 = vmatmul.mubr.bf16.vlgmr.msra.gmra.mxu0 %v2724_v28 }
  0x8f   :  { %1772 = vmatmul.mubr.bf16.vlgmr.msra.gmra.mxu1 %v2726_v29  ;;  %1783 = vmatpush1.bf16.msra.mxu0 %v2418_v30  ;;  %v2510_v30 = vld [vmem:[#allocation2 + $0x10c] ss:$16 sps:$4 sm:$0xff]  }
  0x90   :  { %1826 = vmatpush1.bf16.msra.mxu1 %v2421_v31  ;;  %1784 = vmatprep.subr.bf16.mxu0 %v2426_v32  ;;  %v2513_v31 = vld [vmem:[#allocation2 + $0x30c] ss:$16 sps:$4 sm:$0xff]   ;;  %v2508_v32 = vld [vmem:[#allocation2 + $0x108] ss:$16 sps:$4 sm:$0xff]  }
  0x91   :  { %1827 = vmatprep.subr.bf16.mxu1 %v2429_v33  ;;  %1814 = vmatprep.mubr.bf16.mxu0 %v2670_v53  ;;  %v2445_v53 = vld [vmem:[#allocation2 + $0x268] ss:$16 sps:$4 sm:$0xff]  }
  0x92   :  { %1857 = vmatprep.mubr.bf16.mxu1 %v2672_v54  ;;  %v2450_v54 = vld [vmem:[#allocation2 + $0x4c] ss:$16 sps:$4 sm:$0xff]   ;;  %v2511_v33 = vld [vmem:[#allocation2 + $0x308] ss:$16 sps:$4 sm:$0xff]  }
  0x93   :  { %1785 = vmatpush1.bf16.msra.mxu0 %v2424_v34  ;;  %v2516_v34 = vld [vmem:[#allocation2 + $0x4ec] ss:$16 sps:$4 sm:$0xff]  }
  0x94   :  { %1828 = vmatpush1.bf16.msra.mxu1 %v2427_v35  ;;  %1786 = vmatprep.subr.bf16.mxu0 %v2432_v36  ;;  %v2519_v35 = vld [vmem:[#allocation2 + $0x6ec] ss:$16 sps:$4 sm:$0xff]   ;;  %v2514_v36 = vld [vmem:[#allocation2 + $0x4e8] ss:$16 sps:$4 sm:$0xff]  }
  0x95   :  { %1829 = vmatprep.subr.bf16.mxu1 %v2435_v37  ;;  %v2517_v37 = vld [vmem:[#allocation2 + $0x6e8] ss:$16 sps:$4 sm:$0xff]  }
  0x97   :  { %1787 = vmatpush1.bf16.msra.mxu0 %v2430_v38  ;;  %v2522_v38 = vld [vmem:[#allocation2 + $0x4cc] ss:$16 sps:$4 sm:$0xff]  }
  0x98   :  { %1830 = vmatpush1.bf16.msra.mxu1 %v2433_v39  ;;  %1788 = vmatprep.subr.bf16.mxu0 %v2438_v40  ;;  %v2525_v39 = vld [vmem:[#allocation2 + $0x6cc] ss:$16 sps:$4 sm:$0xff]   ;;  %v2520_v40 = vld [vmem:[#allocation2 + $0x4c8] ss:$16 sps:$4 sm:$0xff]  }
  0x99   :  { %1831 = vmatprep.subr.bf16.mxu1 %v2441_v41  ;;  %v2523_v41 = vld [vmem:[#allocation2 + $0x6c8] ss:$16 sps:$4 sm:$0xff]  }
  0x9b   :  { %1789 = vmatpush1.bf16.msra.mxu0 %v2436_v42  ;;  %v2528_v42 = vld [vmem:[#allocation2 + $0x4ac] ss:$16 sps:$4 sm:$0xff]  }
  0x9c   :  { %1832 = vmatpush1.bf16.msra.mxu1 %v2439_v43  ;;  %1790 = vmatprep.subr.bf16.mxu0 %v2444_v44  ;;  %v2531_v43 = vld [vmem:[#allocation2 + $0x6ac] ss:$16 sps:$4 sm:$0xff]   ;;  %v2526_v44 = vld [vmem:[#allocation2 + $0x4a8] ss:$16 sps:$4 sm:$0xff]  }
  0x9d   :  { %1833 = vmatprep.subr.bf16.mxu1 %v2447_v46  ;;  %v2529_v46 = vld [vmem:[#allocation2 + $0x6a8] ss:$16 sps:$4 sm:$0xff]  }
  0x9f   :  { %1791 = vmatpush1.bf16.msra.mxu0 %v2442_v48  ;;  %v2532_v48 = vld [vmem:[#allocation2 + $0x488] ss:$16 sps:$4 sm:$0xff]  }
  0xa0   :  { %1834 = vmatpush1.bf16.msra.mxu1 %v2445_v53  ;;  %1792 = vmatprep.subr.bf16.mxu0 %v2450_v54  ;;  %v2535_v53 = vld [vmem:[#allocation2 + $0x688] ss:$16 sps:$4 sm:$0xff]   ;;  %v2540_v54 = vld [vmem:[#allocation2 + $0x46c] ss:$16 sps:$4 sm:$0xff]  }
  0xa1   :  { %1835 = vmatprep.subr.bf16.mxu1 %v2453_v49  ;;  %v2543_v49 = vld [vmem:[#allocation2 + $0x66c] ss:$16 sps:$4 sm:$0xff]  }
  0xa3   :  { %1793 = vmatpush1.bf16.msra.mxu0 %v2448_v50  ;;  %v2546_v50 = vld [vmem:[#allocation2 + $0x44c] ss:$16 sps:$4 sm:$0xff]  }
  0xa4   :  { %1836 = vmatpush1.bf16.msra.mxu1 %v2451_v51  ;;  %1794 = vmatprep.subr.bf16.mxu0 %v2456_v52  ;;  %v2549_v51 = vld [vmem:[#allocation2 + $0x64c] ss:$16 sps:$4 sm:$0xff]   ;;  %v2544_v52 = vld [vmem:[#allocation2 + $0x448] ss:$16 sps:$4 sm:$0xff]  }
  0xa5   :  { %1837 = vmatprep.subr.bf16.mxu1 %v2459_v55  ;;  %v2547_v55 = vld [vmem:[#allocation2 + $0x648] ss:$16 sps:$4 sm:$0xff]  }
  0xa7   :  { %1795 = vmatpush1.bf16.msra.mxu0 %v2454_v56  ;;  %v2552_v56 = vld [vmem:[#allocation2 + $0x42c] ss:$16 sps:$4 sm:$0xff]  }
  0xa8   :  { %1838 = vmatpush1.bf16.msra.mxu1 %v2457_v57  ;;  %1796 = vmatprep.subr.bf16.mxu0 %v2462_v58  ;;  %v2555_v57 = vld [vmem:[#allocation2 + $0x62c] ss:$16 sps:$4 sm:$0xff]   ;;  %v2550_v58 = vld [vmem:[#allocation2 + $0x428] ss:$16 sps:$4 sm:$0xff]  }
  0xa9   :  { %1839 = vmatprep.subr.bf16.mxu1 %v2465_v59  ;;  %v2553_v59 = vld [vmem:[#allocation2 + $0x628] ss:$16 sps:$4 sm:$0xff]  }
  0xab   :  { %1797 = vmatpush1.bf16.msra.mxu0 %v2460_v60  ;;  %v2558_v60 = vld [vmem:[#allocation2 + $0x40c] ss:$16 sps:$4 sm:$0xff]  }
  0xac   :  { %1840 = vmatpush1.bf16.msra.mxu1 %v2463_v61  ;;  %1798 = vmatprep.subr.bf16.mxu0 %v2468_v62  ;;  %v2561_v61 = vld [vmem:[#allocation2 + $0x60c] ss:$16 sps:$4 sm:$0xff]   ;;  %v2556_v62 = vld [vmem:[#allocation2 + $0x408] ss:$16 sps:$4 sm:$0xff]  }
  0xad   :  { %1841 = vmatprep.subr.bf16.mxu1 %v2471_v63  ;;  %v2559_v63 = vld [vmem:[#allocation2 + $0x608] ss:$16 sps:$4 sm:$0xff]  }
  0xaf   :  { %1799 = vmatpush2.bf16.msra.mxu0 %v2466_v0  ;;  %v2564_v0 = vld [vmem:[#allocation2 + $0x5ec] ss:$16 sps:$4 sm:$0xff]  }
  0xb0   :  { %1842 = vmatpush2.bf16.msra.mxu1 %v2469_v1  ;;  %1800 = vmatprep.subr.bf16.mxu0 %v2474_v2  ;;  %v2567_v1 = vld [vmem:[#allocation2 + $0x7ec] ss:$16 sps:$4 sm:$0xff]   ;;  %v2562_v2 = vld [vmem:[#allocation2 + $0x5e8] ss:$16 sps:$4 sm:$0xff]  }
  0xb1   :  { %1843 = vmatprep.subr.bf16.mxu1 %v2477_v3  ;;  %v2565_v3 = vld [vmem:[#allocation2 + $0x7e8] ss:$16 sps:$4 sm:$0xff]  }
  0xb3   :  { %1801 = vmatpush2.bf16.msra.mxu0 %v2472_v4  ;;  %v2570_v4 = vld [vmem:[#allocation2 + $0x5cc] ss:$16 sps:$4 sm:$0xff]  }
  0xb4   :  { %1844 = vmatpush2.bf16.msra.mxu1 %v2475_v5  ;;  %1802 = vmatprep.subr.bf16.mxu0 %v2480_v6  ;;  %v2573_v5 = vld [vmem:[#allocation2 + $0x7cc] ss:$16 sps:$4 sm:$0xff]   ;;  %v2568_v6 = vld [vmem:[#allocation2 + $0x5c8] ss:$16 sps:$4 sm:$0xff]  }
  0xb5   :  { %1845 = vmatprep.subr.bf16.mxu1 %v2483_v7  ;;  %v2571_v7 = vld [vmem:[#allocation2 + $0x7c8] ss:$16 sps:$4 sm:$0xff]  }
  0xb7   :  { %1803 = vmatpush2.bf16.msra.mxu0 %v2478_v8  ;;  %v2576_v8 = vld [vmem:[#allocation2 + $0x5ac] ss:$16 sps:$4 sm:$0xff]  }
  0xb8   :  { %1846 = vmatpush2.bf16.msra.mxu1 %v2481_v9  ;;  %1804 = vmatprep.subr.bf16.mxu0 %v2486_v10  ;;  %v2579_v9 = vld [vmem:[#allocation2 + $0x7ac] ss:$16 sps:$4 sm:$0xff]   ;;  %v2574_v10 = vld [vmem:[#allocation2 + $0x5a8] ss:$16 sps:$4 sm:$0xff]  }
  0xb9   :  { %1847 = vmatprep.subr.bf16.mxu1 %v2489_v11  ;;  %v2577_v11 = vld [vmem:[#allocation2 + $0x7a8] ss:$16 sps:$4 sm:$0xff]  }
  0xbb   :  { %1805 = vmatpush2.bf16.msra.mxu0 %v2484_v14  ;;  %v2582_v14 = vld [vmem:[#allocation2 + $0x58c] ss:$16 sps:$4 sm:$0xff]  }
  0xbc   :  { %1848 = vmatpush2.bf16.msra.mxu1 %v2487_v15  ;;  %1806 = vmatprep.subr.bf16.mxu0 %v2492_v16  ;;  %v2585_v15 = vld [vmem:[#allocation2 + $0x78c] ss:$16 sps:$4 sm:$0xff]   ;;  %v2580_v16 = vld [vmem:[#allocation2 + $0x588] ss:$16 sps:$4 sm:$0xff]  }
  0xbd   :  { %1849 = vmatprep.subr.bf16.mxu1 %v2495_v17  ;;  %v2583_v17 = vld [vmem:[#allocation2 + $0x788] ss:$16 sps:$4 sm:$0xff]  }
  0xbf   :  { %1807 = vmatpush2.bf16.msra.mxu0 %v2490_v18  ;;  %v2588_v18 = vld [vmem:[#allocation2 + $0x56c] ss:$16 sps:$4 sm:$0xff]  }
  0xc0   :  { %1850 = vmatpush2.bf16.msra.mxu1 %v2493_v19  ;;  %1808 = vmatprep.subr.bf16.mxu0 %v2498_v20  ;;  %v2591_v19 = vld [vmem:[#allocation2 + $0x76c] ss:$16 sps:$4 sm:$0xff]   ;;  %v2586_v20 = vld [vmem:[#allocation2 + $0x568] ss:$16 sps:$4 sm:$0xff]  }
  0xc1   :  { %1851 = vmatprep.subr.bf16.mxu1 %v2501_v21  ;;  %v2589_v21 = vld [vmem:[#allocation2 + $0x768] ss:$16 sps:$4 sm:$0xff]  }
  0xc3   :  { %1809 = vmatpush2.bf16.msra.mxu0 %v2496_v22  ;;  %v2594_v22 = vld [vmem:[#allocation2 + $0x54c] ss:$16 sps:$4 sm:$0xff]  }
  0xc4   :  { %1852 = vmatpush2.bf16.msra.mxu1 %v2499_v23  ;;  %1810 = vmatprep.subr.bf16.mxu0 %v2504_v24  ;;  %v2597_v23 = vld [vmem:[#allocation2 + $0x74c] ss:$16 sps:$4 sm:$0xff]   ;;  %v2592_v24 = vld [vmem:[#allocation2 + $0x548] ss:$16 sps:$4 sm:$0xff]  }
  0xc5   :  { %1853 = vmatprep.subr.bf16.mxu1 %v2507_v25  ;;  %v2595_v25 = vld [vmem:[#allocation2 + $0x748] ss:$16 sps:$4 sm:$0xff]  }
  0xc7   :  { %1811 = vmatpush2.bf16.msra.mxu0 %v2502_v26  ;;  %v2600_v26 = vld [vmem:[#allocation2 + $0x52c] ss:$16 sps:$4 sm:$0xff]  }
  0xc8   :  { %1854 = vmatpush2.bf16.msra.mxu1 %v2505_v27  ;;  %1812 = vmatprep.subr.bf16.mxu0 %v2510_v30  ;;  %v2603_v27 = vld [vmem:[#allocation2 + $0x72c] ss:$16 sps:$4 sm:$0xff]   ;;  %v2598_v30 = vld [vmem:[#allocation2 + $0x528] ss:$16 sps:$4 sm:$0xff]  }
  0xc9   :  { %1855 = vmatprep.subr.bf16.mxu1 %v2513_v31  ;;  %v2601_v31 = vld [vmem:[#allocation2 + $0x728] ss:$16 sps:$4 sm:$0xff]  }
  0xcb   :  { %1813 = vmatpush2.bf16.msra.mxu0 %v2508_v32  ;;  %v2606_v32 = vld [vmem:[#allocation2 + $0x50c] ss:$16 sps:$4 sm:$0xff]  }
  0xcc   :  { %1856 = vmatpush2.bf16.msra.mxu1 %v2511_v33  ;;  %1868 = vmatprep.subr.bf16.mxu0 %v2516_v34  ;;  %v2609_v33 = vld [vmem:[#allocation2 + $0x70c] ss:$16 sps:$4 sm:$0xff]   ;;  %v2604_v34 = vld [vmem:[#allocation2 + $0x508] ss:$16 sps:$4 sm:$0xff]  }
  0xcd   :  { %1911 = vmatprep.subr.bf16.mxu1 %v2519_v35  ;;  %v2607_v35 = vld [vmem:[#allocation2 + $0x708] ss:$16 sps:$4 sm:$0xff]  }
  0xce   :  { %1815 = vmatmul.mubr.bf16.vlgmr.msra.gmra.mxu0 %v2688_v12  ;;  %v2534_v12 = vld [vmem:[#allocation2 + $0x48c] ss:$16 sps:$4 sm:$0xff]  }
  0xcf   :  { %1858 = vmatmul.mubr.bf16.vlgmr.msra.gmra.mxu1 %v2690_v13  ;;  %1869 = vmatpush1.bf16.msra.mxu0 %v2514_v36  ;;  %v2537_v13 = vld [vmem:[#allocation2 + $0x68c] ss:$16 sps:$4 sm:$0xff]   ;;  %v310_v36 = vlaneseq }
  0xd0   :  { %1912 = vmatpush1.bf16.msra.mxu1 %v2517_v37  ;;  %1870 = vmatprep.subr.bf16.mxu0 %v2522_v38 }
  0xd1   :  { %1913 = vmatprep.subr.bf16.mxu1 %v2525_v39  ;;  %1900 = vmatprep.mubr.bf16.mxu0 %v2703_v45  ;;  %v2538_v45 = vld [vmem:[#allocation2 + $0x468] ss:$16 sps:$4 sm:$0xff]   ;;  %v311_v37 = vshrl.u32 %v310_v36, 7 }
  0xd2   :  { %1943 = vmatprep.mubr.bf16.mxu1 %v2708_v47  ;;  %v2541_v47 = vld [vmem:[#allocation2 + $0x668] ss:$16 sps:$4 sm:$0xff]  }
  0xd3   :  { %1871 = vmatpush1.bf16.msra.mxu0 %v2520_v40  ;;  %v312_v40 = vsub.s32 0, %v311_v37 }
  0xd4   :  { %1914 = vmatpush1.bf16.msra.mxu1 %v2523_v41  ;;  %1872 = vmatprep.subr.bf16.mxu0 %v2528_v42  ;;  %v308_v41 = vld [vmem:[%s2767_s2] sm:$0xf]  ;;  %v316_v42 = vsub.s32 1, %v311_v37 }
  0xd5   :  { %1915 = vmatprep.subr.bf16.mxu1 %v2531_v43 }
  0xd7   :  { %1873 = vmatpush1.bf16.msra.mxu0 %v2526_v44 }
  0xd8   :  { %1916 = vmatpush1.bf16.msra.mxu1 %v2529_v46  ;;  %1874 = vmatprep.subr.bf16.mxu0 %v2534_v12  ;;  %v313_v46 = vrot.slane %v308_v41, %v312_v40  ;;  %v317_v12 = vrot.slane %v308_v41, %v316_v42 }
  0xd9   :  { %1917 = vmatprep.subr.bf16.mxu1 %v2537_v13 }
  0xdb   :  { %1875 = vmatpush1.bf16.msra.mxu0 %v2532_v48 }
  0xdc   :  { %1918 = vmatpush1.bf16.msra.mxu1 %v2535_v53  ;;  %1876 = vmatprep.subr.bf16.mxu0 %v2540_v54 }
  0xdd   :  { %1919 = vmatprep.subr.bf16.mxu1 %v2543_v49 }
  0xdf   :  { %1877 = vmatpush1.bf16.msra.mxu0 %v2538_v45 }
  0xe0   :  { %1920 = vmatpush1.bf16.msra.mxu1 %v2541_v47  ;;  %1878 = vmatprep.subr.bf16.mxu0 %v2546_v50 }
  0xe1   :  { %1921 = vmatprep.subr.bf16.mxu1 %v2549_v51 }
  0xe3   :  { %1879 = vmatpush1.bf16.msra.mxu0 %v2544_v52 }
  0xe4   :  { %1922 = vmatpush1.bf16.msra.mxu1 %v2547_v55  ;;  %1880 = vmatprep.subr.bf16.mxu0 %v2552_v56 }
  0xe5   :  { %1923 = vmatprep.subr.bf16.mxu1 %v2555_v57 }
  0xe7   :  { %1881 = vmatpush1.bf16.msra.mxu0 %v2550_v58 }
  0xe8   :  { %1924 = vmatpush1.bf16.msra.mxu1 %v2553_v59  ;;  %1882 = vmatprep.subr.bf16.mxu0 %v2558_v60 }
  0xe9   :  { %1925 = vmatprep.subr.bf16.mxu1 %v2561_v61 }
  0xeb   :  { %1883 = vmatpush1.bf16.msra.mxu0 %v2556_v62 }
  0xec   :  { %1926 = vmatpush1.bf16.msra.mxu1 %v2559_v63  ;;  %1884 = vmatprep.subr.bf16.mxu0 %v2564_v0 }
  0xed   :  { %1927 = vmatprep.subr.bf16.mxu1 %v2567_v1 }
  0xef   :  { %1885 = vmatpush2.bf16.msra.mxu0 %v2562_v2 }
  0xf0   :  { %1928 = vmatpush2.bf16.msra.mxu1 %v2565_v3  ;;  %1886 = vmatprep.subr.bf16.mxu0 %v2570_v4 }
  0xf1   :  { %1929 = vmatprep.subr.bf16.mxu1 %v2573_v5 }
  0xf3   :  { %1887 = vmatpush2.bf16.msra.mxu0 %v2568_v6 }
  0xf4   :  { %1930 = vmatpush2.bf16.msra.mxu1 %v2571_v7  ;;  %1888 = vmatprep.subr.bf16.mxu0 %v2576_v8 }
  0xf5   :  { %1931 = vmatprep.subr.bf16.mxu1 %v2579_v9  ;;  %v320_v9 = vsub.s32 2, %v311_v37 }
  0xf7   :  { %1889 = vmatpush2.bf16.msra.mxu0 %v2574_v10  ;;  %v324_v10 = vsub.s32 3, %v311_v37 }
  0xf8   :  { %1932 = vmatpush2.bf16.msra.mxu1 %v2577_v11  ;;  %1890 = vmatprep.subr.bf16.mxu0 %v2582_v14 }
  0xf9   :  { %1933 = vmatprep.subr.bf16.mxu1 %v2585_v15  ;;  %v321_v15 = vrot.slane %v308_v41, %v320_v9 }
  0xfb   :  { %1891 = vmatpush2.bf16.msra.mxu0 %v2580_v16  ;;  %v325_v16 = vrot.slane %v308_v41, %v324_v10 }
  0xfc   :  { %1934 = vmatpush2.bf16.msra.mxu1 %v2583_v17  ;;  %1892 = vmatprep.subr.bf16.mxu0 %v2588_v18 }
  0xfd   :  { %1935 = vmatprep.subr.bf16.mxu1 %v2591_v19 }
  0xff   :  { %1893 = vmatpush2.bf16.msra.mxu0 %v2586_v20 }
 0x100   :  { %1936 = vmatpush2.bf16.msra.mxu1 %v2589_v21  ;;  %1894 = vmatprep.subr.bf16.mxu0 %v2594_v22 }
 0x101   :  { %1937 = vmatprep.subr.bf16.mxu1 %v2597_v23 }
 0x103   :  { %1895 = vmatpush2.bf16.msra.mxu0 %v2592_v24 }
 0x104   :  { %1938 = vmatpush2.bf16.msra.mxu1 %v2595_v25  ;;  %1896 = vmatprep.subr.bf16.mxu0 %v2600_v26 }
 0x105   :  { %1939 = vmatprep.subr.bf16.mxu1 %v2603_v27 }
 0x107   :  { %1897 = vmatpush2.bf16.msra.mxu0 %v2598_v30 }
 0x108   :  { %1940 = vmatpush2.bf16.msra.mxu1 %v2601_v31  ;;  %1898 = vmatprep.subr.bf16.mxu0 %v2606_v32 }
 0x109   :  { %1941 = vmatprep.subr.bf16.mxu1 %v2609_v33 }
 0x10b   :  { %1899 = vmatpush2.bf16.msra.mxu0 %v2604_v34 }
 0x10c   :  { %1942 = vmatpush2.bf16.msra.mxu1 %v2607_v35 }
 0x10e   :  { %1901 = vmatmul.mubr.bf16.vlgmr.msra.gmra.mxu0 %v2724_v28  ;;  %v1644_v38 = vpop.f32.mrf.mxu0 }
 0x10f   :  { %1944 = vmatmul.mubr.bf16.vlgmr.msra.gmra.mxu1 %v2726_v29  ;;  %v1687_v39 = vpop.f32.mrf.mxu1  ;;  %v1645_v53 = vadd.f32 %v1644_v38, %v313_v46 }
 0x110   :  { %v1646_v43 = vpop.f32.mrf.mxu0 }
 0x111   :  { %v1689_v44 = vpop.f32.mrf.mxu1  ;;  %v1647_v28 = vadd.f32 %v1646_v43, %v317_v12  ;;  %v1688_v49 = vadd.f32 %v1687_v39, %v1645_v53 }
 0x112   :  { %v1648_v13 = vpop.f32.mrf.mxu0 }
 0x113   :  { %v1691_v48 = vpop.f32.mrf.mxu1  ;;  %v1649_v45 = vadd.f32 %v1648_v13, %v313_v46  ;;  %v1690_v51 = vadd.f32 %v1689_v44, %v1647_v28 }
 0x114   :  { %v1650_v54 = vpop.f32.mrf.mxu0 }
 0x115   :  { %v1693_v29 = vpop.f32.mrf.mxu1  ;;  %v1651_v52 = vadd.f32 %v1650_v54, %v317_v12  ;;  %v1692_v58 = vadd.f32 %v1691_v48, %v1649_v45 }
 0x117   :  { %v1694_v63 = vadd.f32 %v1693_v29, %v1651_v52 }
 0x14e   :  { %v1730_v47 = vpop.f32.mrf.mxu0 }
 0x14f   :  { %v1773_v50 = vpop.f32.mrf.mxu1  ;;  %v1731_v55 = vadd.f32 %v1730_v47, %v1688_v49 }
 0x150   :  { %v1732_v56 = vpop.f32.mrf.mxu0 }
 0x151   :  { %v1775_v57 = vpop.f32.mrf.mxu1  ;;  %v1774_v59 = vadd.f32 %v1773_v50, %v1731_v55  ;;  %v1733_v60 = vadd.f32 %v1732_v56, %v1690_v51 }
 0x152   :  { %v1734_v61 = vpop.f32.mrf.mxu0 }
 0x153   :  { %v1777_v62 = vpop.f32.mrf.mxu1  ;;  %1954 = vst [vmem:[%s2768_s3] sm:$0xff] %v1774_v59  ;;  %v1776_v0 = vadd.f32 %v1775_v57, %v1733_v60  ;;  %v1735_v1 = vadd.f32 %v1734_v61, %v1692_v58 }
 0x154   :  { %v1736_v2 = vpop.f32.mrf.mxu0 }
 0x155   :  { %1955 = vst [vmem:[%s2768_s3 + $0x8] sm:$0xff] %v1776_v0  ;;  %v1778_v3 = vadd.f32 %v1777_v62, %v1735_v1  ;;  %v1737_v4 = vadd.f32 %v1736_v2, %v1694_v63  ;;  %v1779_v5 = vpop.f32.mrf.mxu1 }
 0x157   :  { %1958 = vst [vmem:[%s2768_s3 + $0x20] sm:$0xff] %v1778_v3  ;;  %v1780_v6 = vadd.f32 %v1779_v5, %v1737_v4 }
 0x159   :  { %1959 = vst [vmem:[%s2768_s3 + $0x28] sm:$0xff] %v1780_v6 }
 0x18e   :  { %v1816_v7 = vpop.f32.mrf.mxu0 }
 0x18f   :  { %v1859_v8 = vpop.f32.mrf.mxu1  ;;  %v1817_v19 = vadd.f32 %v1816_v7, %v321_v15 }
 0x190   :  { %v1818_v11 = vpop.f32.mrf.mxu0 }
 0x191   :  { %v1861_v14 = vpop.f32.mrf.mxu1  ;;  %v1819_v20 = vadd.f32 %v1818_v11, %v325_v16  ;;  %v1860_v23 = vadd.f32 %v1859_v8, %v1817_v19 }
 0x192   :  { %v1820_v17 = vpop.f32.mrf.mxu0 }
 0x193   :  { %v1863_v18 = vpop.f32.mrf.mxu1  ;;  %v1821_v24 = vadd.f32 %v1820_v17, %v321_v15  ;;  %v1862_v27 = vadd.f32 %v1861_v14, %v1819_v20 }
 0x194   :  { %v1822_v21 = vpop.f32.mrf.mxu0 }
 0x195   :  { %v1865_v22 = vpop.f32.mrf.mxu1  ;;  %v1823_v30 = vadd.f32 %v1822_v21, %v325_v16  ;;  %v1864_v34 = vadd.f32 %v1863_v18, %v1821_v24 }
 0x197   :  { %v1866_v39 = vadd.f32 %v1865_v22, %v1823_v30 }
 0x1ce   :  { %v1902_v25 = vpop.f32.mrf.mxu0 }
 0x1cf   :  { %v1945_v26 = vpop.f32.mrf.mxu1  ;;  %v1903_v31 = vadd.f32 %v1902_v25, %v1860_v23 }
 0x1d0   :  { %v1904_v32 = vpop.f32.mrf.mxu0 }
 0x1d1   :  { %v1947_v33 = vpop.f32.mrf.mxu1  ;;  %v1946_v35 = vadd.f32 %v1945_v26, %v1903_v31  ;;  %v1905_v36 = vadd.f32 %v1904_v32, %v1862_v27 }
 0x1d2   :  { %v1906_v37 = vpop.f32.mrf.mxu0 }
 0x1d3   :  { %v1949_v38 = vpop.f32.mrf.mxu1  ;;  %1956 = vst [vmem:[%s2768_s3 + $0x10] sm:$0xff] %v1946_v35  ;;  %v1948_v40 = vadd.f32 %v1947_v33, %v1905_v36  ;;  %v1907_v41 = vadd.f32 %v1906_v37, %v1864_v34 }
 0x1d4   :  { %v1908_v42 = vpop.f32.mrf.mxu0 }
 0x1d5   :  { %1957 = vst [vmem:[%s2768_s3 + $0x18] sm:$0xff] %v1948_v40  ;;  %v1950_v43 = vadd.f32 %v1949_v38, %v1907_v41  ;;  %v1909_v44 = vadd.f32 %v1908_v42, %v1866_v39  ;;  %v1951_v46 = vpop.f32.mrf.mxu1 }
 0x1d7   :  { %1960 = vst [vmem:[%s2768_s3 + $0x30] sm:$0xff] %v1950_v43  ;;  %v1952_v12 = vadd.f32 %v1951_v46, %v1909_v44 }
 0x1d9   :  { %1961 = vst [vmem:[%s2768_s3 + $0x38] sm:$0xff] %v1952_v12 }
 0x1da   :  { %1966 = vsyncpa [#allocation3], 1 }

</bundles_post_ra>
